<compile_context>
chip_gen: v7x
topology: tpu7x:2x2x1
jax: 0.10.0
libtpu: 0.0.40
codegen_flags: <defaults>
</compile_context>

<pallas_src>
import math

import jax
import jax.numpy as jnp
import numpy as np
from jax.experimental import pallas as pl
from jax.experimental.pallas import tpu as pltpu


def build_position_encoding_table(dim: int) -> jnp.ndarray:
    """Reproduces the PyTorch __init__ table: shape (dim + 1, dim), float32."""
    pe = np.array(
        [
            [pos / math.pow(10000, 2.0 * (j // 2) / dim) for j in range(dim)]
            for pos in range(dim + 1)
        ],
        dtype=np.float32,
    )
    pe[:, 0::2] = np.sin(pe[:, 0::2])
    pe[:, 1::2] = np.cos(pe[:, 1::2])
    return jnp.asarray(pe, dtype=jnp.float32)


def _pe_add_kernel(x_ref, pe_ref, o_ref):
    # x_ref: (tr, tc) lane-dense block of the flattened activations.
    # pe_ref: (1, tc) slice of the flattened f32 positional table (implicit
    #         (1, tc) -> (tr, tc) broadcast in the add).
    # bf16 x + f32 PE promotes to f32; cast to the activation dtype at the store.
    o_ref[...] = (x_ref[...] + pe_ref[...]).astype(o_ref.dtype)


def _sublane_multiple(dtype) -> int:
    """Rows per packed sublane group: 8 for f32, 16 for bf16, 32 for int8/fp8."""
    return max(8, 32 // jnp.dtype(dtype).itemsize)


def _choose_tiles(n_rows: int, n_cols: int, dtype,
                  target_block_bytes: int = 4 << 20):
    """Pick (row_tile, col_tile): lane-dense, sublane-dense, ~target bytes."""
    bpe = jnp.dtype(dtype).itemsize
    sub = _sublane_multiple(dtype)
    # A block with fewer than `sub` rows still occupies `sub` sublanes of VMEM,
    # so budget the column tile against at least min(sub, n_rows) rows.
    row_quantum = min(sub, n_rows)

    # --- column tile: lane-dense, prefer an exact divisor of n_cols ----------
    max_cols = max(128, target_block_bytes // (row_quantum * bpe))
    if n_cols <= max_cols:
        tc = n_cols  # full width (block dim == array dim is always legal)
    else:
        limit = (max_cols // 128) * 128
        tc = 0
        cand = limit
        while cand >= 128:
            if n_cols % cand == 0:  # exact divisor -> no masked remainder tile
                tc = cand
                break
            cand -= 128
        if tc == 0:
            tc = limit  # no divisor: lane-dense with one remainder tile

    # --- row tile: sublane-dense; >= 2 row tiles when N is large enough ------
    rows_fit = max(1, target_block_bytes // (tc * bpe))
    tr = min(n_rows, rows_fit)
    if n_rows >= 2 * sub:
        # Keep both v7x TensorCores fed: never take the whole batch in one tile.
        half = -(-n_rows // 2)  # cdiv(n_rows, 2)
        tr = min(tr, max(sub, (half // sub) * sub))
    if sub <= tr < n_rows:
        tr = (tr // sub) * sub  # sublane-dense unless we take the full axis
    return tr, tc


def positional_encoding_forward(x: jnp.ndarray, pe_table: jnp.ndarray,
                                *, donate_x: bool = False,
                                target_block_bytes: int = 4 << 20) -> jnp.ndarray:
    """x: (N, L, D); pe_table: (dim+1, dim) f32. Returns x + PE[:L] broadcast over N."""
    N, L, D = x.shape
    assert pe_table.shape[1] == D, "feature dim must match table dim"
    assert L <= pe_table.shape[0], "sequence length exceeds positional table"

    # arange(L) embedding lookup == contiguous slice of the table. Keep it f32
    # so the add itself runs in f32 (cast happens only at the store).
    pe_slice = jax.lax.dynamic_slice(pe_table, (0, 0), (L, D))

    n_cols = L * D
    x2 = x.reshape(N, n_cols)          # contiguous reshape: lane-dense layout
    pe2 = pe_slice.reshape(1, n_cols)  # one row, broadcast over N in-kernel

    bpe = jnp.dtype(x.dtype).itemsize
    tr, tc = _choose_tiles(N, n_cols, x.dtype, target_block_bytes)

    # Columns OUTER, rows INNER: the PE block index (0, c) is constant across
    # all inner row steps, so Pallas re-DMAs each PE column tile exactly once.
    grid = (pl.cdiv(n_cols, tc), pl.cdiv(N, tr))

    cost = pl.CostEstimate(
        flops=N * L * D,
        transcendentals=0,
        bytes_accessed=2 * N * L * D * bpe + L * D * jnp.dtype(pe_table.dtype).itemsize,
    )

    out2 = pl.pallas_call(
        _pe_add_kernel,
        out_shape=jax.ShapeDtypeStruct((N, n_cols), x.dtype),
        grid_spec=pltpu.PrefetchScalarGridSpec(
            num_scalar_prefetch=0,
            grid=grid,
            in_specs=[
                pl.BlockSpec((tr, tc), lambda c, r: (r, c)),
                # PE: block index only changes on the outer column axis.
                pl.BlockSpec((1, tc), lambda c, r: (0, c)),
            ],
            out_specs=pl.BlockSpec((tr, tc), lambda c, r: (r, c)),
        ),
        compiler_params=pltpu.CompilerParams(
            dimension_semantics=("parallel", "parallel"),
            # v5e's default scoped VMEM is ~16 MiB; 4 MiB double-buffered
            # in/out blocks need headroom. 48 MiB is safe on v5e/v6e/v7x
            # (v7x physical per-TC VMEM is 64 MiB).
            vmem_limit_bytes=48 << 20,
        ),
        cost_estimate=cost,
        input_output_aliases=({0: 0} if donate_x else {}),
    )(x2, pe2)

    return out2.reshape(N, L, D)


if __name__ == "__main__":
    # Module config: dim = hidden size D; max_length only sizes the discarded
    # Embedding allocation — the effective table is (dim + 1, dim).
    N, L, D = 2, 8, 32
    max_length = 16  # noqa: F841  (ignored by the overwritten Embedding weight)

    pe_table = build_position_encoding_table(D)  # (33, 32) float32

    key = jax.random.PRNGKey(0)
    x = jax.random.normal(key, (N, L, D), dtype=jnp.float32)

    # f32 activations: bitwise-equivalent to the PyTorch forward.
    out = jax.block_until_ready(positional_encoding_forward(x, pe_table))
    ref = x + pe_table[:L][None, :, :]
    np.testing.assert_allclose(np.asarray(out), np.asarray(ref), rtol=1e-6, atol=1e-6)

    # bf16 activations: add is computed in f32 (PE stays f32), cast at store.
    xb = x.astype(jnp.bfloat16)
    outb = jax.block_until_ready(positional_encoding_forward(xb, pe_table))
    refb = (xb.astype(jnp.float32) + pe_table[:L][None, :, :]).astype(jnp.bfloat16)
    np.testing.assert_allclose(np.asarray(outb.astype(jnp.float32)),
                               np.asarray(refb.astype(jnp.float32)),
                               rtol=1e-2, atol=1e-2)

    print("KERNEL_OK")
</pallas_src>

<mosaic_0001>
module attributes {stable_mosaic.version = 11 : i64} {
  func.func @_pe_add_kernel(%arg0: i32, %arg1: i32, %arg2: memref<2x256xf32, #tpu.memory_space<vmem>>, %arg3: memref<1x256xf32, #tpu.memory_space<vmem>>, %arg4: memref<2x256xf32, #tpu.memory_space<vmem>>) attributes {dimension_semantics = [#tpu.dimension_semantics<parallel>, #tpu.dimension_semantics<parallel>], iteration_bounds = array<i64: 1, 1>, scalar_prefetch = 0 : i64, scratch_operands = 0 : i64, tpu.core_type = #tpu.core_type<tc>, window_params = [{transform_indices = @transform_0, window_bounds = array<i64: 2, 256>}, {transform_indices = @transform_1, window_bounds = array<i64: 1, 256>}, {transform_indices = @transform_2, window_bounds = array<i64: 2, 256>}]} {
    %c0 = arith.constant 0 : index
    %c0_0 = arith.constant 0 : index
    %0 = vector.load %arg2[%c0, %c0_0] : memref<2x256xf32, #tpu.memory_space<vmem>>, vector<2x256xf32>
    %c0_1 = arith.constant 0 : index
    %c0_2 = arith.constant 0 : index
    %1 = vector.load %arg3[%c0_1, %c0_2] : memref<1x256xf32, #tpu.memory_space<vmem>>, vector<1x256xf32>
    %2 = vector.broadcast %1 : vector<1x256xf32> to vector<2x256xf32>
    %3 = arith.addf %0, %2 : vector<2x256xf32>
    %c0_3 = arith.constant 0 : index
    %c0_4 = arith.constant 0 : index
    %4 = vector.load %arg4[%c0_3, %c0_4] : memref<2x256xf32, #tpu.memory_space<vmem>>, vector<2x256xf32>
    tpu.vector_store %arg4[%c0_3, %c0_4], %3 {strides = array<i32>} : memref<2x256xf32, #tpu.memory_space<vmem>>, vector<2x256xf32>,
    return
  }
  func.func @transform_0(%arg0: i32, %arg1: i32) -> (i32, i32) {
    %c0_i32 = arith.constant 0 : i32
    return %arg1, %arg0 : i32, i32
  }
  func.func @transform_1(%arg0: i32, %arg1: i32) -> (i32, i32) {
    %c0_i32 = arith.constant 0 : i32
    %c0_i32_0 = arith.constant 0 : i32
    return %c0_i32, %arg0 : i32, i32
  }
  func.func @transform_2(%arg0: i32, %arg1: i32) -> (i32, i32) {
    %c0_i32 = arith.constant 0 : i32
    return %arg1, %arg0 : i32, i32
  }
}

</mosaic_0001>

<bundles_post_ra>
// kernel: tpu_custom_call.1
= control target key start
LH: loop header
LB: loop body
LE: loop exit
PB: predicated region body
PF: predicated region fallthrough
CT: control target
= control target key end

     0   :  { %7 = vsyncpa [#allocation3], 0  ;;  %s157_s0 = inlined_call_operand.hbm [shape: f32[2,256], index: 0, kind: input, shape index: {}]   ;;  %s158_s1 = inlined_call_operand.vmem [shape: f32[1,256], index: 1, kind: input, shape index: {}]   ;;  %s159_s2 = inlined_call_operand.hbm [shape: f32[2,256], index: 2, kind: output, shape index: {}]  }
   0x1   :  { %8 = vsyncpa [#allocation4], 0  ;;  %s112_s9 = smov [#allocation2]   ;;  %s64_s13 = scalar_lea.hbm %s157_s0, 64 }
   0x2   :  { %s15_s10 = sshll.u32 %s112_s9, 4  ;;  %p65_p0 = scmp.ne.s32.totalorder %s157_s0, %s64_s13  ;;  %s16_s10 = int_to_ptr.vmem [resolvable:$true] %s15_s10 }
   0x3   :  { %p68_p1 = scmp.lt.u32.totalorder %s64_s13, %s157_s0 }
   0x5   :  { %p70_p2 = pnand %p68_p1, %p65_p0 }
   0x7   :  { %73 = shalt.err (!%p70_p2)
}
   0x8   :  { %s74_s18 = scalar_lea.vmem %s16_s10, 64  ;;  %p79_p4 = scmp.lt.s32.totalorder %s16_s10, %s16_s10 }
   0x9   :  { %p75_p3 = scmp.ne.s32.totalorder %s16_s10, %s74_s18  ;;  %p80_p5 = scmp.lt.s32.totalorder %s74_s18, %s74_s18 }
   0xb   :  { %p81_p6 = por %p80_p5, %p79_p4 }
   0xd   :  { %p82_p7 = pnand %p81_p6, %p75_p3 }
   0xf   :  { %85 = shalt.err (!%p82_p7)
}
  0x10   :  { %18 = dma.hbm_to_vmem [thread:$0]  %s157_s0, 64, %s16_s10, [#allocation3]  }
  0x11   :  { %108 = dma.done.wait [#allocation3], 64  }
  0x12   :  { %109 = vsyncadd [#allocation3], 4294967232  ;;  %v27_v0 = vlaneseq  ;;  %v113_v1 = vmov 1983009808   ;;  %v25_v7 = vld [vmem:[%s158_s1] sm:$0x3] }
  0x13   :  { %v37_v2 = vunpack.c.l.s4 %v113_v1  ;;  %v24_v12 = vld [vmem:[#allocation2] sm:$0xf]  ;;  %s114_s23 = smov [#allocation5]  }
  0x14   :  { %v28_v3 = vshrl.u32 %v27_v0, 7  ;;  %s52_s0 = sshll.u32 %s114_s23, 4  ;;  %s53_s0 = int_to_ptr.vmem [resolvable:$true] %s52_s0 }
  0x15   :  { %v38_v6 = vunpack.c.0.s8 %v37_v2  ;;  %s86_s24 = scalar_lea.vmem %s53_s0, 64  ;;  %p91_p9 = scmp.lt.s32.totalorder %s53_s0, %s53_s0 }
  0x16   :  { %v29_v4 = vsub.s32 0, %v28_v3  ;;  %v33_v5 = vsub.s32 1, %v28_v3  ;;  %p87_p8 = scmp.ne.s32.totalorder %s53_s0, %s86_s24  ;;  %p92_p10 = scmp.lt.s32.totalorder %s86_s24, %s86_s24 }
  0x17   :  { %v41_v10 = vsub.s32 %v38_v6, %v28_v3 }
  0x18   :  { %v30_v8 = vrot.slane %v25_v7, %v29_v4  ;;  %v34_v9 = vrot.slane %v25_v7, %v33_v5  ;;  %p93_p11 = por %p92_p10, %p91_p9 }
  0x1a   :  { %v35_v11 = vcombine.low %v30_v8, %v34_v9  ;;  %p94_p12 = pnand %p93_p11, %p87_p8 }
  0x1c   :  { %v42_v13 = vrot.slane %v35_v11, %v41_v10 }
  0x1e   :  { %v44_v14 = vadd.f32 %v42_v13, %v24_v12 }
  0x20   :  { %45 = vst [vmem:[#allocation5] sm:$0xf] %v44_v14 }
  0x21   :  { %97 = shalt.err (!%p94_p12)
}
  0x22   :  { %s98_s26 = scalar_lea.hbm %s159_s2, 64 }
  0x23   :  { %p99_p13 = scmp.ne.s32.totalorder %s159_s2, %s98_s26  ;;  %p102_p0 = scmp.lt.u32.totalorder %s98_s26, %s159_s2 }
  0x25   :  { %p104_p1 = pnand %p102_p0, %p99_p13 }
  0x27   :  { %107 = shalt.err (!%p104_p1)
}
  0x28   :  { %55 = dma.vmem_to_hbm [thread:$0]  %s53_s0, 64, %s159_s2, [#allocation4]  }
  0x29   :  { %110 = dma.done.wait [#allocation4], 64  }
  0x2a   :  { %111 = vsyncadd [#allocation4], 4294967232 }
  0x2b   :  { %59 = vsyncpa [#allocation3], 1 }
  0x2c   :  { %60 = vsyncpa [#allocation4], 1 }

</bundles_post_ra>
